<compile_context>
chip_gen: v6e
topology: v6e:2x2x1
jax: 0.10.0
libtpu: 0.0.40
codegen_flags: <defaults>
</compile_context>

<pallas_src>
import functools

import numpy as np
import jax
import jax.numpy as jnp
from jax.experimental import pallas as pl
from jax.experimental.pallas import tpu as pltpu


def _round_up(x, m):
    return ((x + m - 1) // m) * m


def _vmem_capacity_bytes():
    """Physical VMEM per TensorCore; conservative fallback if query fails."""
    try:
        return int(pltpu.get_tpu_info().vmem_capacity_bytes)
    except Exception:
        return 64 * 1024 * 1024          # v7x per-TC size -> safe everywhere


# ------------------------------ Pallas kernel --------------------------------

def _sage_kernel(*refs, tu, embed_resident, gcn):
    """Fused MEAN aggregation + SageLayer affine + ReLU for one row tile."""
    if gcn:
        mask_ref, embed_ref, invdeg_ref, wagg_ref, out_ref, acc_ref = refs
    else:
        (mask_ref, embed_ref, invdeg_ref, self_ref, wself_ref, wagg_ref,
         out_ref, acc_ref, selfacc_ref) = refs

    k = pl.program_id(1)

    @pl.when(k == 0)
    def _init():
        acc_ref[...] = jnp.zeros_like(acc_ref)
        if not gcn:
            # Hoisted off the finalize step so MXU work spreads across the
            # reduction instead of piling onto the last k.
            selfacc_ref[...] = jnp.dot(self_ref[...], wself_ref[...],
                                       preferred_element_type=jnp.float32)

    # int8 0/1 mask -> bf16 right before the dot (mask is the dominant HBM
    # stream; int8 storage halves its bytes, cast rides free VPU slots).
    mask_bf16 = mask_ref[...].astype(jnp.float32).astype(jnp.bfloat16)

    if embed_resident and embed_ref.shape[0] != tu:
        # embed is VMEM-resident: slice the current reduction tile in-kernel.
        e = embed_ref[pl.ds(pl.multiple_of(k * tu, tu), tu), :]
    else:
        e = embed_ref[...]

    acc_ref[...] += jnp.dot(mask_bf16, e, preferred_element_type=jnp.float32)

    @pl.when(k == pl.num_programs(1) - 1)
    def _finalize():
        agg = (acc_ref[...] * invdeg_ref[...]).astype(jnp.bfloat16)
        z = jnp.dot(agg, wagg_ref[...], preferred_element_type=jnp.float32)
        if not gcn:
            z = z + selfacc_ref[...]
        out_ref[...] = jnp.maximum(z, 0.0).astype(out_ref.dtype)


# ------------------------------ layer wrapper ---------------------------------

def _vmem_bytes(tm, tu, U_pad, Dp, Op, out_bytes, gcn, embed_resident):
    """Double-buffered VMEM footprint (bytes) of one layer call."""
    b = 2 * tm * tu                                         # int8 mask tiles
    b += 2 * (U_pad if embed_resident else tu) * Dp * 2     # bf16 embed
    b += 2 * tm * 128 * 4                                   # f32 1/deg (lane pad)
    b += 2 * Dp * Op * 2                                    # W_agg^T (resident)
    b += 2 * tm * Op * out_bytes                            # output tile
    b += tm * Dp * 4                                        # f32 acc scratch
    if not gcn:
        b += 2 * tm * Dp * 2                                # self-feature tile
        b += 2 * Dp * Op * 2                                # W_self^T (resident)
        b += tm * Op * 4                                    # hoisted self-matmul
    return b


def _plan_layer(B, U_real, rows_have, Dp, vmem_cap):
    """Choose (tm, B_pad, tu, U_pad, embed_resident) for one layer."""
    budget = (vmem_cap * 3) // 4
    big_vmem = vmem_cap >= 96 * 1024 * 1024          # v5e/v6e (128 MiB) vs v7x
    tm_target = 512 if big_vmem else 256
    tu_target = 1024 if big_vmem else 512

    # Rows: 32-row granularity (int8 mask sublane tiling); produce >=2 row
    # tiles whenever the padded batch allows so the "parallel" grid axis can
    # shard across v7x's two TensorCores.
    B32 = _round_up(max(B, 8), 32)
    if B32 < 64:
        tm = B32
    else:
        tm = min(tm_target, _round_up((B32 + 1) // 2, 32))
    B_pad = _round_up(B32, tm)

    # Reduction (unique-neighbor) axis: single step with resident embed when it
    # fits; otherwise tile at tu_target, keeping embed resident if the whole
    # padded matrix still fits the budget.
    U_min = rows_have if rows_have else _round_up(max(U_real, 8), 16)
    single_step_cost = 2 * tm * U_min + 2 * U_min * Dp * 2
    if single_step_cost <= budget // 2:
        tu, U_pad, resident = U_min, U_min, True
    else:
        tu = tu_target
        U_pad = _round_up(max(U_real, rows_have, tu), tu)
        resident = (2 * U_pad * Dp * 2 + 2 * tm * tu) <= budget // 2
    return tm, B_pad, tu, U_pad, resident


@functools.partial(jax.jit, static_argnames=("tm", "tu", "embed_resident",
                                              "gcn", "out_dtype", "vmem_limit"))
def sage_layer_pallas(mask, inv_deg, embed, self_feats, w_self_t, w_agg_t, *,
                      tm, tu, embed_resident, gcn, out_dtype, vmem_limit):
    """relu(self @ Wself^T + ((mask01 @ embed) * inv_deg) @ Wagg^T), padded."""
    B_pad, U_pad = mask.shape
    Dp, Op = w_agg_t.shape
    grid = (B_pad // tm, U_pad // tu)

    if embed_resident:
        embed_spec = pl.BlockSpec((U_pad, Dp), lambda i, k: (0, 0))  # resident
    else:
        embed_spec = pl.BlockSpec((tu, Dp), lambda i, k: (k, 0))     # streamed

    in_specs = [
        pl.BlockSpec((tm, tu), lambda i, k: (i, k)),     # int8 0/1 mask tile
        embed_spec,                                      # bf16 neighbor feats
        pl.BlockSpec((tm, 1), lambda i, k: (i, 0)),      # f32 1/deg
    ]
    scratch = [pltpu.VMEM((tm, Dp), jnp.float32)]        # aggregation acc
    if gcn:
        args = (mask, embed, inv_deg, w_agg_t)
    else:
        in_specs += [
            pl.BlockSpec((tm, Dp), lambda i, k: (i, 0)),   # self feats
            # TODO(synk): pipeline_mode=pl.Buffered(1) on the resident weight
            # specs would free one VMEM buffer each on v7x; left at default
            # double buffering for maximum jax-version compatibility.
            pl.BlockSpec((Dp, Op), lambda i, k: (0, 0)),   # W_self^T (resident)
        ]
        args = (mask, embed, inv_deg, self_feats, w_self_t, w_agg_t)
        scratch.append(pltpu.VMEM((tm, Op), jnp.float32))  # hoisted self-matmul
    in_specs += [pl.BlockSpec((Dp, Op), lambda i, k: (0, 0))]  # W_agg^T (resident)

    kernel = functools.partial(_sage_kernel, tu=tu,
                               embed_resident=embed_resident, gcn=gcn)
    return pl.pallas_call(
        kernel,
        out_shape=jax.ShapeDtypeStruct((B_pad, Op), out_dtype),
        grid_spec=pltpu.PrefetchScalarGridSpec(
            num_scalar_prefetch=0,
            grid=grid,
            in_specs=in_specs,
            out_specs=pl.BlockSpec((tm, Op), lambda i, k: (i, 0)),
            scratch_shapes=scratch,
        ),
        compiler_params=pltpu.CompilerParams(
            dimension_semantics=("parallel", "arbitrary"),
            vmem_limit_bytes=int(vmem_limit),
        ),
    )(*args)


# ------------------------------ GraphSage (JAX) -------------------------------

def xavier_uniform(key, shape):
    fan_out, fan_in = shape  # 2-D tensor: (rows, cols) like torch
    bound = float(np.sqrt(6.0 / (fan_in + fan_out)))
    return jax.random.uniform(key, shape, jnp.float32, -bound, bound)


class GraphSage:
    """JAX/Pallas port of the PyTorch GraphSage forward pass (MEAN aggregator)."""

    def __init__(self, num_layers, input_size, out_size, raw_features, adj_lists,
                 key, gcn=False, agg_func='MEAN'):
        assert agg_func == 'MEAN'
        # TODO(synk): agg_func='MAX' (ragged per-node max gather) has no clean
        # dense Pallas mapping here and is not implemented.
        self.num_layers = num_layers
        self.input_size = input_size
        self.out_size = out_size
        self.gcn = gcn
        self.agg_func = agg_func
        self.raw_features_np = np.asarray(raw_features, dtype=np.float32)
        self.adj_lists = adj_lists

        self.weights = []       # padded (Dp, Op) bf16: (W_self^T, W_agg^T)
        self.weights_ref = []   # unpadded f32 (pure-JAX reference path)
        keys = jax.random.split(key, num_layers)
        Op = _round_up(out_size, 128)
        for index in range(1, num_layers + 1):
            layer_size = out_size if index != 1 else input_size
            Dp = _round_up(layer_size, 128)
            w_cols = layer_size if gcn else 2 * layer_size
            w = np.asarray(xavier_uniform(keys[index - 1], (out_size, w_cols)))
            if gcn:
                w_self_t = None
                w_agg_t = np.ascontiguousarray(w.T)
            else:
                w_self_t = np.ascontiguousarray(w[:, :layer_size].T)
                w_agg_t = np.ascontiguousarray(w[:, layer_size:].T)

            def _pad_w(wt):
                p = np.zeros((Dp, Op), np.float32)
                p[:layer_size, :out_size] = wt
                return jnp.asarray(p, dtype=jnp.bfloat16)

            self.weights.append((None if gcn else _pad_w(w_self_t),
                                 _pad_w(w_agg_t)))
            self.weights_ref.append(
                (None if gcn else jnp.asarray(w_self_t, jnp.float32),
                 jnp.asarray(w_agg_t, jnp.float32)))

    # ---- host-side graph sampling (pure Python, mirrors the PyTorch code) ----

    def _get_unique_neighs_list(self, nodes, num_sample=10):
        trainnode_cen = {}
        for node in list(self.adj_lists):
            sum_degree = 0
            node_neis_list = list(self.adj_lists[node])
            for node_nei in node_neis_list:
                sum_degree += len(self.adj_lists[node_nei])
            if sum_degree != 0:
                trainnode_cen[node] = 1.0 * len(node_neis_list) / sum_degree
            else:
                trainnode_cen[node] = 0
        to_neighs = [self.adj_lists[int(node)] for node in nodes]
        samp_neighs = []
        if num_sample is not None:
            for to_neigh in to_neighs:
                if len(to_neigh) >= num_sample:
                    neigh_degree = {n: trainnode_cen[n] for n in to_neigh}
                    neigh_degree = sorted(neigh_degree.items(), key=lambda item: item[1])
                    neighs_list = [n for n, _ in neigh_degree]
                    samp_neighs_set = set()
                    for i in range(10):
                        samp_neighs_set.add(neighs_list[-i - 1])
                    samp_neighs.append(samp_neighs_set)
                else:
                    samp_neighs.append(set(to_neigh))
        else:
            samp_neighs = [set(t) for t in to_neighs]
        samp_neighs = [samp_neigh | set([nodes[i]]) for i, samp_neigh in enumerate(samp_neighs)]
        _unique_nodes_list = list(set.union(*samp_neighs))
        unique_nodes = dict(zip(_unique_nodes_list, range(len(_unique_nodes_list))))
        return samp_neighs, unique_nodes, _unique_nodes_list

    def _nodes_map(self, nodes, hidden_embs, neighs):
        layer_nodes, samp_neighs, layer_nodes_dict = neighs
        assert len(samp_neighs) == len(nodes)
        return [layer_nodes_dict[x] for x in nodes]

    def _neighbor_structure(self, nodes, pre_neighs):
        """Shared host-side mask-index construction (mirrors torch aggregate)."""
        unique_nodes_list, samp_neighs, unique_nodes = pre_neighs
        assert len(nodes) == len(samp_neighs)
        indicator = [nodes[i] in samp_neighs[i] for i in range(len(samp_neighs))]
        assert False not in indicator
        if not self.gcn:
            samp_neighs = [samp_neighs[i] - set([nodes[i]]) for i in range(len(samp_neighs))]
        column_indices = [unique_nodes[n] for samp_neigh in samp_neighs for n in samp_neigh]
        row_indices = [i for i in range(len(samp_neighs)) for _ in range(len(samp_neighs[i]))]
        return row_indices, column_indices, len(unique_nodes), unique_nodes_list

    # -------------------------------- forward --------------------------------

    def forward(self, nodes_batch, use_pallas=True):
        lower_layer_nodes = list(nodes_batch)
        nodes_batch_layers = [(lower_layer_nodes,)]
        for _ in range(self.num_layers):
            lower_samp_neighs, lower_layer_nodes_dict, lower_layer_nodes = \
                self._get_unique_neighs_list(lower_layer_nodes)
            nodes_batch_layers.insert(
                0, (lower_layer_nodes, lower_samp_neighs, lower_layer_nodes_dict))
        assert len(nodes_batch_layers) == self.num_layers + 1
        if use_pallas:
            return self._forward_pallas(nodes_batch_layers)
        return self._forward_reference(nodes_batch_layers)

    def _forward_pallas(self, nodes_batch_layers):
        vmem_cap = _vmem_capacity_bytes()
        raw_np = self.raw_features_np
        Op = _round_up(self.out_size, 128)
        pre = None          # padded bf16/f32 activations, kept padded across layers
        final_rows = None
        for index in range(1, self.num_layers + 1):
            nb = nodes_batch_layers[index][0]
            pre_neighs = nodes_batch_layers[index - 1]
            row_idx, col_idx, U_real, unique_nodes_list = \
                self._neighbor_structure(nb, pre_neighs)
            B = len(nb)
            layer_size = self.input_size if index == 1 else self.out_size
            Dp = _round_up(layer_size, 128)
            rows_have = 0 if index == 1 else int(pre.shape[0])
            tm, B_pad, tu, U_pad, resident = _plan_layer(
                B, U_real, rows_have, Dp, vmem_cap)

            # Host-built, already-padded inputs (no jnp.pad round trips).
            mask_np = np.zeros((B_pad, U_pad), np.int8)
            if row_idx:
                mask_np[row_idx, col_idx] = 1
            deg = mask_np[:B, :U_real].astype(np.float32).sum(axis=1, keepdims=True)
            inv_np = np.ones((B_pad, 1), np.float32)
            inv_np[:B] = 1.0 / np.maximum(deg, 1.0)   # guard deg==0 (torch NaNs)

            if index == 1:
                emb_np = np.zeros((U_pad, Dp), np.float32)
                if raw_np.shape[0] == U_real:
                    emb_np[:U_real, :layer_size] = raw_np
                else:
                    emb_np[:U_real, :layer_size] = raw_np[
                        np.asarray(unique_nodes_list, np.int64)]
                embed = jnp.asarray(emb_np, dtype=jnp.bfloat16)
            else:
                embed = pre   # previous layer's padded bf16 activations, reused as-is
                if embed.shape[0] != U_pad:
                    # TODO(synk): rare repad when the reduction tiling does not
                    # divide the previous layer's padded row count.
                    embed = jnp.pad(embed, ((0, U_pad - embed.shape[0]), (0, 0)))

            if self.gcn:
                self_feats = None
            elif index == 1:
                self_np = np.zeros((B_pad, Dp), np.float32)
                self_np[:B, :layer_size] = raw_np[np.asarray(nb, np.int64)]
                self_feats = jnp.asarray(self_np, dtype=jnp.bfloat16)
            else:
                nb_rows = self._nodes_map(nb, pre, pre_neighs)
                idx = np.zeros((B_pad,), np.int32)
                idx[:B] = np.asarray(nb_rows, np.int32)
                self_feats = pre[jnp.asarray(idx)]   # padded rows harmless

            w_self_t, w_agg_t = self.weights[index - 1]
            is_last = index == self.num_layers
            out_dtype = jnp.float32 if is_last else jnp.bfloat16
            need = _vmem_bytes(tm, tu, U_pad, Dp, Op,
                               np.dtype(out_dtype).itemsize, self.gcn, resident)
            vmem_limit = int(min((vmem_cap * 3) // 4,
                                 max(need + (8 << 20), 32 << 20)))

            pre = sage_layer_pallas(
                jnp.asarray(mask_np), jnp.asarray(inv_np), embed, self_feats,
                w_self_t, w_agg_t, tm=tm, tu=tu, embed_resident=resident,
                gcn=self.gcn, out_dtype=out_dtype, vmem_limit=vmem_limit)
            final_rows = B
        # The single unpad/slice of the whole pipeline.
        return pre[:final_rows, :self.out_size]

    def _forward_reference(self, nodes_batch_layers):
        """Pure-JAX f32 reference path (mirrors the PyTorch forward)."""
        pre_hidden_embs = jnp.asarray(self.raw_features_np, jnp.float32)
        for index in range(1, self.num_layers + 1):
            nb = nodes_batch_layers[index][0]
            pre_neighs = nodes_batch_layers[index - 1]
            unique_nodes_list = pre_neighs[0]
            row_idx, col_idx, U_real, _ = self._neighbor_structure(nb, pre_neighs)
            B = len(nb)
            mask = np.zeros((B, U_real), np.float32)
            if row_idx:
                mask[row_idx, col_idx] = 1.0
            num_neigh = mask.sum(1, keepdims=True)
            mask = mask / np.maximum(num_neigh, 1.0)   # same deg==0 guard
            if int(pre_hidden_embs.shape[0]) == U_real:
                embed = pre_hidden_embs
            else:
                embed = pre_hidden_embs[jnp.asarray(unique_nodes_list, jnp.int32)]
            agg = jnp.asarray(mask) @ embed
            if index > 1:
                nb = self._nodes_map(nb, pre_hidden_embs, pre_neighs)
            w_self_t, w_agg_t = self.weights_ref[index - 1]
            z = agg @ w_agg_t
            if not self.gcn:
                self_feats = pre_hidden_embs[jnp.asarray(nb, jnp.int32)]
                z = z + self_feats @ w_self_t
            pre_hidden_embs = jnp.maximum(z, 0.0)
        return pre_hidden_embs


# ----------------------------------- main ------------------------------------

if __name__ == "__main__":
    num_nodes = 40
    input_size = 16
    out_size = 32
    num_layers = 2

    # Deterministic synthetic graph: each node connects to 11 fixed offsets.
    offsets = [1, 2, 3, 5, 7, 11, 13, -1, -2, -4, -6]
    adj_lists = {i: {(i + o) % num_nodes for o in offsets} for i in range(num_nodes)}

    key = jax.random.PRNGKey(0)
    k_feat, k_w = jax.random.split(key)
    raw_features = np.asarray(
        jax.random.normal(k_feat, (num_nodes, input_size), jnp.float32))

    model = GraphSage(num_layers, input_size, out_size, raw_features, adj_lists,
                      key=k_w, gcn=False, agg_func='MEAN')

    nodes_batch = list(range(8))
    out = jax.block_until_ready(model.forward(nodes_batch, use_pallas=True))
    assert out.shape == (len(nodes_batch), out_size)
    assert bool(jnp.all(jnp.isfinite(out)))

    # Compare against the pure-JAX f32 reference (loose tol: bf16 operands,
    # bf16 intermediate activations compound over the 2 layers).
    ref = jax.block_until_ready(model.forward(nodes_batch, use_pallas=False))
    err = float(jnp.max(jnp.abs(out - ref)))
    scale = float(jnp.max(jnp.abs(ref))) + 1e-6
    assert err / scale < 0.1, f"kernel vs reference mismatch: {err / scale:.4f}"

    print("KERNEL_OK")
</pallas_src>

<mosaic_0001>
module attributes {stable_mosaic.version = 11 : i64} {
  func.func @_sage_kernel(%arg0: i32, %arg1: i32, %arg2: memref<32x48xi8, #tpu.memory_space<vmem>>, %arg3: memref<48x128xbf16, #tpu.memory_space<vmem>>, %arg4: memref<32x1xf32, #tpu.memory_space<vmem>>, %arg5: memref<32x128xbf16, #tpu.memory_space<vmem>>, %arg6: memref<128x128xbf16, #tpu.memory_space<vmem>>, %arg7: memref<128x128xbf16, #tpu.memory_space<vmem>>, %arg8: memref<32x128xbf16, #tpu.memory_space<vmem>>, %arg9: memref<32x128xf32, #tpu.memory_space<vmem>>, %arg10: memref<32x128xf32, #tpu.memory_space<vmem>>) attributes {dimension_semantics = [#tpu.dimension_semantics<parallel>, #tpu.dimension_semantics<arbitrary>], iteration_bounds = array<i64: 1, 1>, scalar_prefetch = 0 : i64, scratch_operands = 2 : i64, tpu.core_type = #tpu.core_type<tc>, window_params = [{transform_indices = @transform_0, window_bounds = array<i64: 32, 48>}, {pipeline_mode = #tpu.pipeline_mode<synchronous>, transform_indices = @transform_1, window_bounds = array<i64: 48, 128>}, {transform_indices = @transform_2, window_bounds = array<i64: 32, 1>}, {transform_indices = @transform_3, window_bounds = array<i64: 32, 128>}, {pipeline_mode = #tpu.pipeline_mode<synchronous>, transform_indices = @transform_4, window_bounds = array<i64: 128, 128>}, {pipeline_mode = #tpu.pipeline_mode<synchronous>, transform_indices = @transform_5, window_bounds = array<i64: 128, 128>}, {transform_indices = @transform_6, window_bounds = array<i64: 32, 128>}]} {
    %c0_i32 = arith.constant 0 : i32
    %0 = arith.cmpi eq, %arg1, %c0_i32 : i32
    %1 = arith.extui %0 : i1 to i32
    %c0_i32_0 = arith.constant 0 : i32
    %2 = arith.cmpi ne, %1, %c0_i32_0 : i32
    scf.if %2 {
      %cst_10 = arith.constant 0.000000e+00 : f32
      %14 = vector.broadcast %cst_10 : f32 to vector<32x128xf32>
      %c0_11 = arith.constant 0 : index
      %c0_12 = arith.constant 0 : index
      %15 = vector.load %arg9[%c0_11, %c0_12] : memref<32x128xf32, #tpu.memory_space<vmem>>, vector<32x128xf32>
      tpu.vector_store %arg9[%c0_11, %c0_12], %14 {strides = array<i32>} : memref<32x128xf32, #tpu.memory_space<vmem>>, vector<32x128xf32>,
      %c0_13 = arith.constant 0 : index
      %c0_14 = arith.constant 0 : index
      %16 = vector.load %arg5[%c0_13, %c0_14] : memref<32x128xbf16, #tpu.memory_space<vmem>>, vector<32x128xbf16>
      %c0_15 = arith.constant 0 : index
      %c0_16 = arith.constant 0 : index
      %17 = vector.load %arg6[%c0_15, %c0_16] : memref<128x128xbf16, #tpu.memory_space<vmem>>, vector<128x128xbf16>
      %cst_17 = arith.constant dense<0.000000e+00> : vector<32x128xf32>
      %18 = tpu.matmul %16, %17, %cst_17 {dimension_numbers = #tpu.dot_dimension_numbers<[1], [0], [0], [1], [0, 0, 1, 1], [], []>} : vector<32x128xbf16>, vector<128x128xbf16>, vector<32x128xf32> -> vector<32x128xf32>
      %c0_18 = arith.constant 0 : index
      %c0_19 = arith.constant 0 : index
      %19 = vector.load %arg10[%c0_18, %c0_19] : memref<32x128xf32, #tpu.memory_space<vmem>>, vector<32x128xf32>
      tpu.vector_store %arg10[%c0_18, %c0_19], %18 {strides = array<i32>} : memref<32x128xf32, #tpu.memory_space<vmem>>, vector<32x128xf32>,
    } else {
    }
    %c0 = arith.constant 0 : index
    %c0_1 = arith.constant 0 : index
    %3 = vector.load %arg2[%c0, %c0_1] : memref<32x48xi8, #tpu.memory_space<vmem>>, vector<32x48xi8>
    %4 = arith.sitofp %3 : vector<32x48xi8> to vector<32x48xf32>
    %5 = arith.truncf %4 : vector<32x48xf32> to vector<32x48xbf16>
    %c0_2 = arith.constant 0 : index
    %c0_3 = arith.constant 0 : index
    %6 = vector.load %arg3[%c0_2, %c0_3] : memref<48x128xbf16, #tpu.memory_space<vmem>>, vector<48x128xbf16>
    %c0_4 = arith.constant 0 : index
    %c0_5 = arith.constant 0 : index
    %7 = vector.load %arg9[%c0_4, %c0_5] : memref<32x128xf32, #tpu.memory_space<vmem>>, vector<32x128xf32>
    %cst = arith.constant dense<0.000000e+00> : vector<32x128xf32>
    %8 = tpu.matmul %5, %6, %cst {dimension_numbers = #tpu.dot_dimension_numbers<[1], [0], [0], [1], [0, 0, 1, 1], [], []>} : vector<32x48xbf16>, vector<48x128xbf16>, vector<32x128xf32> -> vector<32x128xf32>
    %9 = arith.addf %7, %8 : vector<32x128xf32>
    %c0_6 = arith.constant 0 : index
    %c0_7 = arith.constant 0 : index
    %10 = vector.load %arg9[%c0_6, %c0_7] : memref<32x128xf32, #tpu.memory_space<vmem>>, vector<32x128xf32>
    tpu.vector_store %arg9[%c0_6, %c0_7], %9 {strides = array<i32>} : memref<32x128xf32, #tpu.memory_space<vmem>>, vector<32x128xf32>,
    %c0_i32_8 = arith.constant 0 : i32
    %11 = arith.cmpi eq, %arg1, %c0_i32_8 : i32
    %12 = arith.extui %11 : i1 to i32
    %c0_i32_9 = arith.constant 0 : i32
    %13 = arith.cmpi ne, %12, %c0_i32_9 : i32
    scf.if %13 {
      %c0_10 = arith.constant 0 : index
      %c0_11 = arith.constant 0 : index
      %14 = vector.load %arg9[%c0_10, %c0_11] : memref<32x128xf32, #tpu.memory_space<vmem>>, vector<32x128xf32>
      %c0_12 = arith.constant 0 : index
      %c0_13 = arith.constant 0 : index
      %15 = vector.load %arg4[%c0_12, %c0_13] : memref<32x1xf32, #tpu.memory_space<vmem>>, vector<32x1xf32>
      %16 = vector.broadcast %15 : vector<32x1xf32> to vector<32x128xf32>
      %17 = arith.mulf %14, %16 : vector<32x128xf32>
      %18 = arith.truncf %17 : vector<32x128xf32> to vector<32x128xbf16>
      %c0_14 = arith.constant 0 : index
      %c0_15 = arith.constant 0 : index
      %19 = vector.load %arg7[%c0_14, %c0_15] : memref<128x128xbf16, #tpu.memory_space<vmem>>, vector<128x128xbf16>
      %cst_16 = arith.constant dense<0.000000e+00> : vector<32x128xf32>
      %20 = tpu.matmul %18, %19, %cst_16 {dimension_numbers = #tpu.dot_dimension_numbers<[1], [0], [0], [1], [0, 0, 1, 1], [], []>} : vector<32x128xbf16>, vector<128x128xbf16>, vector<32x128xf32> -> vector<32x128xf32>
      %c0_17 = arith.constant 0 : index
      %c0_18 = arith.constant 0 : index
      %21 = vector.load %arg10[%c0_17, %c0_18] : memref<32x128xf32, #tpu.memory_space<vmem>>, vector<32x128xf32>
      %22 = arith.addf %20, %21 : vector<32x128xf32>
      %cst_19 = arith.constant 0.000000e+00 : f32
      %23 = vector.broadcast %cst_19 : f32 to vector<32x128xf32>
      %24 = arith.maximumf %22, %23 : vector<32x128xf32>
      %25 = arith.truncf %24 : vector<32x128xf32> to vector<32x128xbf16>
      %c0_20 = arith.constant 0 : index
      %c0_21 = arith.constant 0 : index
      %26 = vector.load %arg8[%c0_20, %c0_21] : memref<32x128xbf16, #tpu.memory_space<vmem>>, vector<32x128xbf16>
      tpu.vector_store %arg8[%c0_20, %c0_21], %25 {strides = array<i32>} : memref<32x128xbf16, #tpu.memory_space<vmem>>, vector<32x128xbf16>,
    } else {
    }
    return
  }
  func.func @transform_0(%arg0: i32, %arg1: i32) -> (i32, i32) {
    %c0_i32 = arith.constant 0 : i32
    return %arg0, %arg1 : i32, i32
  }
  func.func @transform_1(%arg0: i32, %arg1: i32) -> (i32, i32) {
    %c0_i32 = arith.constant 0 : i32
    %c0_i32_0 = arith.constant 0 : i32
    %c0_i32_1 = arith.constant 0 : i32
    return %c0_i32, %c0_i32_0 : i32, i32
  }
  func.func @transform_2(%arg0: i32, %arg1: i32) -> (i32, i32) {
    %c0_i32 = arith.constant 0 : i32
    %c0_i32_0 = arith.constant 0 : i32
    return %arg0, %c0_i32 : i32, i32
  }
  func.func @transform_3(%arg0: i32, %arg1: i32) -> (i32, i32) {
    %c0_i32 = arith.constant 0 : i32
    %c0_i32_0 = arith.constant 0 : i32
    return %arg0, %c0_i32 : i32, i32
  }
  func.func @transform_4(%arg0: i32, %arg1: i32) -> (i32, i32) {
    %c0_i32 = arith.constant 0 : i32
    %c0_i32_0 = arith.constant 0 : i32
    %c0_i32_1 = arith.constant 0 : i32
    return %c0_i32, %c0_i32_0 : i32, i32
  }
  func.func @transform_5(%arg0: i32, %arg1: i32) -> (i32, i32) {
    %c0_i32 = arith.constant 0 : i32
    %c0_i32_0 = arith.constant 0 : i32
    %c0_i32_1 = arith.constant 0 : i32
    return %c0_i32, %c0_i32_0 : i32, i32
  }
  func.func @transform_6(%arg0: i32, %arg1: i32) -> (i32, i32) {
    %c0_i32 = arith.constant 0 : i32
    %c0_i32_0 = arith.constant 0 : i32
    return %arg0, %c0_i32 : i32, i32
  }
}

</mosaic_0001>

<bundles_post_ra>
// kernel: sage_layer_pallas.1
= control target key start
LH: loop header
LB: loop body
LE: loop exit
PB: predicated region body
PF: predicated region fallthrough
CT: control target
= control target key end

     0   :  { %11 = vsyncpa [#allocation5], 0  ;;  %s823_s0 = inlined_call_operand.vmem [shape: s8[32,48], index: 0, kind: input, shape index: {}]   ;;  %s824_s1 = inlined_call_operand.vmem [shape: bf16[48,128], index: 1, kind: input, shape index: {}]   ;;  %s825_s2 = inlined_call_operand.vmem [shape: f32[32,1], index: 2, kind: input, shape index: {}]   ;;  %s826_s3 = inlined_call_operand.hbm [shape: bf16[32,128], index: 3, kind: input, shape index: {}]   ;;  %s827_s4 = inlined_call_operand.hbm [shape: bf16[128,128], index: 4, kind: input, shape index: {}]   ;;  %s828_s5 = inlined_call_operand.hbm [shape: bf16[128,128], index: 5, kind: input, shape index: {}]   ;;  %s829_s6 = inlined_call_operand.hbm [shape: bf16[32,128], index: 6, kind: output, shape index: {}]  }
   0x1   :  { %12 = vsyncpa [#allocation8], 0 }
   0x2   :  { %13 = vsyncpa [#allocation6], 0  ;;  %s731_s21 = smov [#allocation7]   ;;  %s732_s23 = smov [#allocation4]  }
   0x3   :  { %s37_s22 = sshll.u32 %s731_s21, 4  ;;  %s25_s24 = sshll.u32 %s732_s23, 4  ;;  %s38_s22 = int_to_ptr.vmem [resolvable:$true] %s37_s22  ;;  %s26_s24 = int_to_ptr.vmem [resolvable:$true] %s25_s24 }
   0x4   :  { %s653_s25 = scalar_lea.vmem %s38_s22, 1024  ;;  %p658_p1 = scmp.lt.s32.totalorder %s38_s22, %s38_s22 }
   0x5   :  { %p654_p0 = scmp.ne.s32.totalorder %s38_s22, %s653_s25  ;;  %p659_p2 = scmp.lt.s32.totalorder %s653_s25, %s653_s25 }
   0x7   :  { %p660_p3 = por %p659_p2, %p658_p1 }
   0x9   :  { %p661_p4 = pnand %p660_p3, %p654_p0 }
   0xb   :  { %664 = shalt.err (!%p661_p4)
}
   0xc   :  { %s733_s26 = smov 64   ;;  %s734_s27 = smov 4  }
   0xd   :  { %43 = dma.hbm_to_vmem [thread:$0]  %s827_s4, 1024, %s38_s22, [#allocation8], %s733_s26, %s733_s26, %s734_s27  }
   0xe   :  { %s673_s30 = scalar_lea.vmem %s26_s24, 256  ;;  %p678_p6 = scmp.lt.s32.totalorder %s26_s24, %s26_s24 }
   0xf   :  { %p674_p5 = scmp.ne.s32.totalorder %s26_s24, %s673_s30  ;;  %p679_p7 = scmp.lt.s32.totalorder %s673_s30, %s673_s30 }
  0x11   :  { %p680_p8 = por %p679_p7, %p678_p6 }
  0x13   :  { %p681_p9 = pnand %p680_p8, %p674_p5 }
  0x15   :  { %684 = shalt.err (!%p681_p9)
}
  0x16   :  { %31 = dma.hbm_to_vmem [thread:$0]  %s826_s3, 256, %s26_s24, [#allocation5], %s733_s26, %s733_s26, %s734_s27  }
  0x17   :  { %s735_s9 = smov [#allocation9]  }
  0x18   :  { %s49_s10 = sshll.u32 %s735_s9, 4  ;;  %s50_s10 = int_to_ptr.vmem [resolvable:$true] %s49_s10 }
  0x19   :  { %s693_s11 = scalar_lea.vmem %s50_s10, 1024  ;;  %p698_p11 = scmp.lt.s32.totalorder %s50_s10, %s50_s10 }
  0x1a   :  { %p694_p10 = scmp.ne.s32.totalorder %s50_s10, %s693_s11  ;;  %p699_p12 = scmp.lt.s32.totalorder %s693_s11, %s693_s11 }
  0x1c   :  { %p700_p13 = por %p699_p12, %p698_p11 }
  0x1e   :  { %p701_p0 = pnand %p700_p13, %p694_p10 }
  0x20   :  { %704 = shalt.err (!%p701_p0)
}
  0x21   :  { %55 = dma.hbm_to_vmem [thread:$0]  %s828_s5, 1024, %s50_s10, [#allocation8], %s733_s26, %s733_s26, %s734_s27  }
  0x22   :  { %725 = dma.done.wait [#allocation5], 256  }
  0x23   :  { %726 = vsyncadd [#allocation5], 4294967040 }
  0x24   :  { %727 = dma.done.wait [#allocation8], 2048  }
  0x25   :  { %728 = vsyncadd [#allocation8], 4294965248  ;;  %v736_v0 = vmov 0   ;;  %v624_v1 = vld [vmem:[%s824_s1 + $0x10] sm:$0xff]   ;;  %v625_v2 = vld [vmem:[%s824_s1 + $0x8] sm:$0xff]   ;;  %vm238_vm0 = vcmask 392192  }
  0x26   :  { %622 = vset.pattern.permute.xlu0 %v736_v0  ;;  %623 = vset.pattern.permute.xlu1 %v736_v0  ;;  %v626_v3 = vld [vmem:[%s824_s1] sm:$0xff]   ;;  %v311_v6 = vld [vmem:[%s825_s2 + $0x10] sm:$0xff]  ;;  %v310_v8 = vld [vmem:[%s825_s2 + $0x8] sm:$0xff] }
  0x27   :  { %585 = vmatprep.subr.bf16.mxu1 %v624_v1  ;;  %v207_v4 = vld [vmem:[%s823_s0] sm:$0xff]  ;;  %v312_v9 = vld [vmem:[%s825_s2 + $0x18] sm:$0xff]  ;;  %325 = vperm.xlu1 %623, %v311_v6   ;;  %v627_v10 = vld [vmem:[#allocation7 + $0x38] sm:$0xff]   ;;  %s737_s0 = smov [#allocation10]  }
  0x28   :  { %586 = vmatpush3.bf16.msra.mxu1 %v624_v1  ;;  %v309_v5 = vld [vmem:[%s825_s2] sm:$0xff]  ;;  %v208_v7 = vunpack.c.l.s8.bf16 %v207_v4  ;;  %565 = vmatprep.subr.bf16.mxu0 %v627_v10  ;;  %v629_v12 = vld [vmem:[#allocation9 + $0x38] sm:$0xff]   ;;  %v209_v13 = vunpack.c.h.s8.bf16 %v207_v4  ;;  %v630_v14 = vld [vmem:[#allocation7 + $0x28] sm:$0xff]   ;;  %s485_s2 = sshll.u32 %s737_s0, 4  ;;  %s486_s2 = int_to_ptr.vmem [resolvable:$true] %s485_s2 }
  0x29   :  { %587 = vmatprep.subr.bf16.mxu1 %v625_v2  ;;  %315 = vperm.xlu0 %622, %v309_v5   ;;  %v628_v11 = vld [vmem:[#allocation7 + $0x30] sm:$0xff]   ;;  %v632_v16 = vld [vmem:[#allocation7 + $0x20] sm:$0xff]   ;;  %v633_v17 = vld [vmem:[#allocation9 + $0x28] sm:$0xff]   ;;  %s705_s28 = scalar_lea.vmem %s486_s2, 256  ;;  %p710_p2 = scmp.lt.s32.totalorder %s486_s2, %s486_s2 }
  0x2a   :  { %591 = vmatprep.mubr.msk.bf16.mxu1 %vm238_vm0, %v208_v7  ;;  %566 = vmatpush3.bf16.msra.mxu0 %v627_v10  ;;  %v631_v15 = vld [vmem:[#allocation9 + $0x30] sm:$0xff]   ;;  %v634_v18 = vld [vmem:[#allocation7 + $0x18] sm:$0xff]   ;;  %v635_v19 = vld [vmem:[#allocation9 + $0x20] sm:$0xff]   ;;  %p706_p1 = scmp.ne.s32.totalorder %s486_s2, %s705_s28  ;;  %p711_p3 = scmp.lt.s32.totalorder %s705_s28, %s705_s28 }
  0x2b   :  { %330 = vperm.xlu1 %623, %v312_v9   ;;  %567 = vmatprep.subr.bf16.mxu0 %v628_v11  ;;  %v636_v20 = vld [vmem:[#allocation7 + $0x10] sm:$0xff]   ;;  %v637_v21 = vld [vmem:[#allocation9 + $0x18] sm:$0xff]   ;;  %v638_v22 = vld [vmem:[#allocation7 + $0x8] sm:$0xff]  }
  0x2c   :  { %588 = vmatpush3.bf16.msra.mxu1 %v625_v2  ;;  %v639_v23 = vld [vmem:[#allocation9 + $0x10] sm:$0xff]   ;;  %v640_v24 = vld [vmem:[#allocation7] sm:$0xff]   ;;  %v641_v25 = vld [vmem:[#allocation9 + $0x8] sm:$0xff]   ;;  %p712_p4 = por %p711_p3, %p710_p2 }
  0x2d   :  { %589 = vmatprep.subr.bf16.mxu1 %v626_v3  ;;  %320 = vperm.xlu0 %622, %v310_v8   ;;  %v642_v26 = vld [vmem:[#allocation4] sm:$0xff]   ;;  %v643_v27 = vld [vmem:[#allocation4 + $0x8] sm:$0xff]   ;;  %v644_v28 = vld [vmem:[#allocation9] sm:$0xff]  }
  0x2e   :  { %568 = vmatpush3.bf16.msra.mxu0 %v628_v11  ;;  %581 = vmatprep.mubr.bf16.mxu0 %v642_v26  ;;  %p713_p5 = pnand %p712_p4, %p706_p1 }
  0x2f   :  { %569 = vmatprep.subr.bf16.mxu0 %v630_v14 }
  0x30   :  { %590 = vmatpush3.bf16.msra.mxu1 %v626_v3 }
  0x31   :  { %595 = vmatprep.subr.bf16.mxu1 %v629_v12 }
  0x32   :  { %570 = vmatpush3.bf16.msra.mxu0 %v630_v14 }
  0x33   :  { %592 = vmatmul.mubr.msk.bf16.vlgmr.msra.gmra.mxu1 %vm238_vm0, %v209_v13  ;;  %571 = vmatprep.subr.bf16.mxu0 %v632_v16 }
  0x34   :  { %596 = vmatpush3.bf16.msra.mxu1 %v629_v12 }
  0x35   :  { %597 = vmatprep.subr.bf16.mxu1 %v631_v15 }
  0x36   :  { %572 = vmatpush3.bf16.msra.mxu0 %v632_v16 }
  0x37   :  { %573 = vmatprep.subr.bf16.mxu0 %v634_v18 }
  0x38   :  { %598 = vmatpush3.bf16.msra.mxu1 %v631_v15 }
  0x39   :  { %599 = vmatprep.subr.bf16.mxu1 %v633_v17 }
  0x3a   :  { %574 = vmatpush3.bf16.msra.mxu0 %v634_v18 }
  0x3b   :  { %575 = vmatprep.subr.bf16.mxu0 %v636_v20 }
  0x3c   :  { %600 = vmatpush3.bf16.msra.mxu1 %v633_v17 }
  0x3d   :  { %601 = vmatprep.subr.bf16.mxu1 %v635_v19 }
  0x3e   :  { %576 = vmatpush3.bf16.msra.mxu0 %v636_v20 }
  0x3f   :  { %577 = vmatprep.subr.bf16.mxu0 %v638_v22 }
  0x40   :  { %602 = vmatpush3.bf16.msra.mxu1 %v635_v19 }
  0x41   :  { %603 = vmatprep.subr.bf16.mxu1 %v637_v21 }
  0x42   :  { %578 = vmatpush3.bf16.msra.mxu0 %v638_v22 }
  0x43   :  { %579 = vmatprep.subr.bf16.mxu0 %v640_v24 }
  0x44   :  { %604 = vmatpush3.bf16.msra.mxu1 %v637_v21 }
  0x45   :  { %605 = vmatprep.subr.bf16.mxu1 %v639_v23 }
  0x46   :  { %580 = vmatpush3.bf16.msra.mxu0 %v640_v24 }
  0x48   :  { %606 = vmatpush3.bf16.msra.mxu1 %v639_v23 }
  0x49   :  { %607 = vmatprep.subr.bf16.mxu1 %v641_v25  ;;  %582 = vmatmul.mubr.bf16.vlgmr.msra.gmra.mxu0 %v643_v27 }
  0x4c   :  { %608 = vmatpush3.bf16.msra.mxu1 %v641_v25 }
  0x4d   :  { %609 = vmatprep.subr.bf16.mxu1 %v644_v28 }
  0x50   :  { %610 = vmatpush3.bf16.msra.mxu1 %v644_v28 }
  0xa2   :  { %v326_v29 = vpop.permute.xlu1 %325 }
  0xa4   :  { %v316_v30 = vpop.permute.xlu0 %315 }
  0xa6   :  { %v331_v33 = vpop.permute.xlu1 %330 }
  0xa8   :  { %v321_v35 = vpop.permute.xlu0 %320 }
  0xf3   :  { %v593_v31 = vpop.f32.mrf.mxu1 }
  0xf4   :  { %v335_v40 = vmul.f32 %v593_v31, %v326_v29 }
  0xf5   :  { %v279_v32 = vpop.f32.mrf.mxu1 }
  0xf6   :  { %v333_v38 = vmul.f32 %v316_v30, %v279_v32 }
  0xf7   :  { %v594_v34 = vpop.f32.mrf.mxu1 }
  0xf8   :  { %v336_v36 = vmul.f32 %v594_v34, %v331_v33 }
  0xf9   :  { %v282_v37 = vpop.f32.mrf.mxu1 }
  0xfa   :  { %v334_v39 = vmul.f32 %v321_v35, %v282_v37  ;;  %v338_v42 = vpack.c.bf16 %v336_v36, %v335_v40 }
  0xfc   :  { %v337_v41 = vpack.c.bf16 %v334_v39, %v333_v38 }
  0xfe   :  { %611 = vmatprep.mubr.bf16.mxu1 %v337_v41 }
  0xff   :  { %612 = vmatmul.mubr.bf16.vlgmr.msra.gmra.mxu1 %v338_v42 }
 0x109   :  { %v583_v43 = vpop.f32.mrf.mxu0 }
 0x10b   :  { %v188_v44 = vpop.f32.mrf.mxu0 }
 0x10d   :  { %v584_v46 = vpop.f32.mrf.mxu0 }
 0x10f   :  { %v191_v52 = vpop.f32.mrf.mxu0 }
 0x1bf   :  { %v613_v45 = vpop.f32.mrf.mxu1 }
 0x1c0   :  { %v450_v48 = vadd.f32 %v613_v45, %v583_v43 }
 0x1c1   :  { %v441_v47 = vpop.f32.mrf.mxu1 }
 0x1c2   :  { %v442_v50 = vadd.f32 %v441_v47, %v188_v44  ;;  %v458_v54 = vmax.f32 %v450_v48, 0.0 }
 0x1c3   :  { %v614_v49 = vpop.f32.mrf.mxu1 }
 0x1c4   :  { %v453_v51 = vadd.f32 %v614_v49, %v584_v46  ;;  %v456_v57 = vmax.f32 %v442_v50, 0.0 }
 0x1c5   :  { %v444_v53 = vpop.f32.mrf.mxu1 }
 0x1c6   :  { %v459_v55 = vmax.f32 %v453_v51, 0.0  ;;  %v445_v56 = vadd.f32 %v444_v53, %v191_v52 }
 0x1c8   :  { %v537_v58 = vpack.c.bf16 %v459_v55, %v458_v54  ;;  %v457_v59 = vmax.f32 %v445_v56, 0.0 }
 0x1ca   :  { %539 = vst [vmem:[#allocation10 + $0x8] sm:$0xff] %v537_v58   ;;  %v532_v60 = vpack.c.bf16 %v457_v59, %v456_v57 }
 0x1cc   :  { %533 = vst [vmem:[#allocation10] sm:$0xff] %v532_v60  }
 0x1cd   :  { %716 = shalt.err (!%p713_p5)
}
 0x1ce   :  { %491 = dma.vmem_to_hbm [thread:$0]  %s486_s2, 256, %s829_s6, [#allocation6], %s733_s26, %s733_s26, %s734_s27  }
 0x1cf   :  { %729 = dma.done.wait [#allocation6], 256  }
 0x1d0   :  { %730 = vsyncadd [#allocation6], 4294967040 }
 0x1d1   :  { %495 = vsyncpa [#allocation5], 1 }
 0x1d2   :  { %496 = vsyncpa [#allocation8], 1 }
 0x1d3   :  { %497 = vsyncpa [#allocation6], 1 }

</bundles_post_ra>
